<compile_context>
chip_gen: v5e
topology: v5e:2x2
jax: 0.10.0
libtpu: 0.0.40
codegen_flags: <defaults>
</compile_context>

<pallas_src>
import math
import numpy as np

import jax
import jax.numpy as jnp
from jax.experimental import pallas as pl
from jax.experimental.pallas import tpu as pltpu

KSIZE = 5          # GaussianSmoothing(channels=1, kernel_size=5, sigma=1.5)
PAD = KSIZE // 2
MAX_KRON_BYTES = 8 * 1024 * 1024   # above this, fall back to the roll+mask H/W passes


def gaussian_taps_1d(sigma):
    """1-D separable taps; outer(g, g, g) equals the reference's normalized 3-D kernel."""
    ax = np.arange(KSIZE, dtype=np.float64)
    mean = (KSIZE - 1) / 2.0
    g = (1.0 / (sigma * math.sqrt(2.0 * math.pi))) * np.exp(-((ax - mean) / sigma) ** 2 / 2.0)
    g = g / g.sum()
    return [float(v) for v in g]


def _banded_conv_matrix(n, taps):
    """A[o, i] = taps[i - o + PAD]; A @ x == zero-padded 'same' 1-D conv of x along axis 0."""
    a = np.zeros((n, n), np.float32)
    for o in range(n):
        for k in range(KSIZE):
            i = o + k - PAD
            if 0 <= i < n:
                a[o, i] = taps[k]
    return a


def point_rasterize(points, values, size):
    """Trilinear scatter-add splat of `values` onto a 3D grid. Output: (B, C, Gx, Gy, Gz).

    # TODO(synk): `point_rasterize` is an external function not defined in the module
    # source; this is the canonical trilinear splat (periodic index wrap). Kept in plain
    # JAX but fused into ONE segment-sum scatter over all 8 corners (per perf review).
    # A scalar-prefetch Pallas splat kernel would be the next step for very large B*N.
    """
    B, N, _ = points.shape
    C = values.shape[-1]
    sx, sy, sz = int(size[0]), int(size[1]), int(size[2])
    g_total = sx * sy * sz

    p = points.astype(jnp.float32) * jnp.asarray(size, jnp.float32)
    p0 = jnp.floor(p)
    frac = p - p0
    p0i = p0.astype(jnp.int32)

    corners = np.array([[dx, dy, dz] for dx in (0, 1) for dy in (0, 1) for dz in (0, 1)],
                       np.int32)                                           # (8, 3)
    idx = (p0i[:, :, None, :] + corners[None, None]) % jnp.asarray(size, jnp.int32)  # (B,N,8,3)
    w = jnp.where(corners[None, None] == 1, frac[:, :, None, :], 1.0 - frac[:, :, None, :])
    w = w.prod(-1)                                                         # (B, N, 8)
    flat = idx[..., 0] * (sy * sz) + idx[..., 1] * sz + idx[..., 2]        # (B, N, 8)
    contrib = values.astype(jnp.float32)[:, :, None, :] * w[..., None]     # (B, N, 8, C)

    flat = flat.reshape(B, N * 8)
    contrib = contrib.reshape(B, N * 8, C)
    grid = jax.vmap(lambda v, i: jax.ops.segment_sum(v, i, num_segments=g_total))(contrib, flat)
    grid = grid.reshape((B, sx, sy, sz, C))
    return jnp.transpose(grid, (0, 4, 1, 2, 3))


def _pick_bt(B, bytes_per_batch):
    """Fold Bt batches per grid step (amortize ~0.35us/step pipeline overhead) while
    keeping >=2 grid steps when possible (v7x has 2 TensorCores) and staying well under
    the default 32 MiB scoped-VMEM limit with double buffering."""
    if B <= 2:
        return 1
    vmem_budget = 16 * 1024 * 1024
    max_bt = max(1, vmem_budget // (2 * bytes_per_batch))
    bt = max(1, min(B // 2, max_bt, 8))       # cap static unroll depth / vreg pressure
    while bt > 1 and B % bt:                  # Bt must divide B
        bt -= 1
    return bt


def _make_kernel(taps, Bt, D, H, W, use_kron):
    HW = H * W
    tap_c = float(taps[PAD])

    def divergence(prev0, x1, x2):
        # Divergence exactly as in the reference:
        #   sum_i ( torch.roll(field_V, 1, dims=i)[:, i] - field_V[:, i] )
        # i=0 rolls BATCH (prev0 is channel 0 of batch b-1, supplied via BlockSpec/halo),
        # i=1 rolls CHANNEL (its term telescopes to ch0[b]-ch1[b]; combined with i=0 the
        #      ch0[b] contributions cancel, so channel 0 of batch b is never read),
        # i=2 rolls depth (periodic, one XLU sublane roll).
        return prev0 - x1 + (pltpu.roll(x2, shift=1, axis=0) - x2)

    if use_kron:
        def kernel(halo_ref, x_ref, dmat_ref, hwmat_ref, o_ref):
            dmat = dmat_ref[...]      # (D, D)  depth-pass operator
            hwmat = hwmat_ref[...]    # (HW, HW) fused H+W pass operator (zero pad baked in)
            # Bt is small (<=8): static unroll == lax.fori_loop(..., unroll=True).
            for j in range(Bt):
                prev0 = halo_ref[...] if j == 0 else x_ref[j - 1, 0]
                div = divergence(prev0, x_ref[j, 1], x_ref[j, 2])
                t = jnp.dot(dmat, div, preferred_element_type=jnp.float32)   # depth pass (MXU)
                t = jnp.dot(t, hwmat, preferred_element_type=jnp.float32)    # H+W pass (MXU)
                o_ref[j] = jax.nn.sigmoid(t)
        return kernel

    # Fallback for large G (kron matrix would not fit): roll+mask H/W passes with the
    # boundary masks folded into per-tap constant coefficient planes, computed ONCE per
    # block (not per tap per sub-batch). The depth pass stays on the MXU (D x D is tiny).
    def kernel(halo_ref, x_ref, dmat_ref, o_ref):
        dmat = dmat_ref[...]
        fi = jax.lax.broadcasted_iota(jnp.int32, (D, HW), 1)
        if (W & (W - 1)) == 0:                       # power-of-two fast path (no int div)
            wi = fi & (W - 1)
            hi = fi >> int(round(math.log2(W)))
        else:
            wi = fi % W
            hi = fi // W
        h_coef, w_coef = {}, {}
        for k in range(KSIZE):
            off = k - PAD
            if off == 0:
                continue
            hv = (hi >= -off) if off < 0 else (hi < H - off)
            wv = (wi >= -off) if off < 0 else (wi < W - off)
            h_coef[k] = jnp.where(hv, jnp.float32(taps[k]), jnp.float32(0.0))
            w_coef[k] = jnp.where(wv, jnp.float32(taps[k]), jnp.float32(0.0))

        def pass_1d(t, coef, unit):
            acc = tap_c * t
            for k in range(KSIZE):
                if k == PAD:
                    continue
                off = k - PAD
                acc = acc + coef[k] * pltpu.roll(t, shift=(-off * unit) % HW, axis=1)
            return acc

        for j in range(Bt):
            prev0 = halo_ref[...] if j == 0 else x_ref[j - 1, 0]
            div = divergence(prev0, x_ref[j, 1], x_ref[j, 2])
            t = jnp.dot(dmat, div, preferred_element_type=jnp.float32)       # depth pass (MXU)
            t = pass_1d(t, h_coef, W)                                        # height pass
            t = pass_1d(t, w_coef, 1)                                        # width pass
            o_ref[j] = jax.nn.sigmoid(t)

    return kernel


def divergence_smooth_sigmoid(field_V, sigma):
    """field_V: (B, 3, D, H, W) -> sigmoid(gauss_smooth(divergence)) of shape (B, D, H, W)."""
    B, C, D, H, W = field_V.shape
    assert C == 3
    HW = H * W
    # Lane-dense layout: fold (H, W) into one trailing dim (contiguous reshape, free in
    # XLA) so every in-kernel vector access spans 256 lanes at G=16 instead of 16.
    # NOTE(scaling, not needed at G=16): for large grid_size store fv/out in bf16 on
    # v6e/v7x, raise vmem_limit_bytes on v6e, and add a D-tiled grid axis (PAD=2 halo or
    # the banded-D matmul) on v7x where whole-volume blocks exceed its 64 MiB VMEM.
    fv = field_V.astype(jnp.float32).reshape(B, C, D, HW)

    taps = gaussian_taps_1d(sigma)
    dmat = jnp.asarray(_banded_conv_matrix(D, taps))                 # (D, D)
    use_kron = HW * HW * 4 <= MAX_KRON_BYTES

    bytes_per_batch = (3 + 1 + 1) * D * HW * 4                        # channels + halo + out
    Bt = _pick_bt(B, bytes_per_batch)
    grid = (B // Bt,)

    # Two data DMAs per step: all 3 channels of the Bt batches in one rectangular block,
    # plus channel 0 of the batch just before the block (for the reference's batch roll).
    halo_spec = pl.BlockSpec((None, None, D, HW), lambda g: ((g * Bt + B - 1) % B, 0, 0, 0))
    x_spec = pl.BlockSpec((Bt, 3, D, HW), lambda g: (g, 0, 0, 0))
    dmat_spec = pl.BlockSpec((D, D), lambda g: (0, 0))                # constant, fetched once
    in_specs = [halo_spec, x_spec, dmat_spec]
    inputs = [fv, fv, dmat]
    if use_kron:
        a_h = _banded_conv_matrix(H, taps)
        a_w = _banded_conv_matrix(W, taps)
        hwmat = jnp.asarray(np.kron(a_h.T, a_w.T))                    # (HW, HW) right-mul op
        in_specs.append(pl.BlockSpec((HW, HW), lambda g: (0, 0)))
        inputs.append(hwmat)

    out_flat = pl.pallas_call(
        _make_kernel(taps, Bt, D, H, W, use_kron),
        out_shape=jax.ShapeDtypeStruct((B, D, HW), jnp.float32),
        grid_spec=pltpu.PrefetchScalarGridSpec(
            num_scalar_prefetch=0,
            grid=grid,
            in_specs=in_specs,
            out_specs=pl.BlockSpec((Bt, D, HW), lambda g: (g, 0, 0)),
        ),
        compiler_params=pltpu.CompilerParams(dimension_semantics=("parallel",)),
    )(*inputs)
    return out_flat.reshape(B, D, H, W)


def poisson_net_forward(points, normals, grid_size=16, sigma=1.5):
    assert normals.shape == points.shape
    assert points.shape[-1] == 3
    assert points.ndim == 3
    field_V = point_rasterize(points, normals, (grid_size, grid_size, grid_size))
    # TODO(synk): self.FNO(...), div_normalizer.decode(...) and divergence_tensor_batch
    # are undefined externals in the reference module; only the final torch.sigmoid of
    # the smoothed divergence is computed here.
    return divergence_smooth_sigmoid(field_V, sigma)


def _reference_div_smooth_sigmoid(field_V, sigma):
    """Pure-JAX reference of the Pallas hot path (divergence -> 5^3 Gaussian -> sigmoid)."""
    fv = field_V.astype(jnp.float32)
    div = jnp.zeros(fv.shape[:1] + fv.shape[2:], jnp.float32)
    for i in range(3):
        div = div + jnp.roll(fv, 1, axis=i)[:, i] - fv[:, i]
    taps = jnp.asarray(gaussian_taps_1d(sigma), jnp.float32)
    k3 = taps[:, None, None] * taps[None, :, None] * taps[None, None, :]
    out = jax.lax.conv_general_dilated(div[:, None], k3[None, None],
                                       window_strides=(1, 1, 1), padding="SAME")
    return jax.nn.sigmoid(out[:, 0])


if __name__ == "__main__":
    key = jax.random.PRNGKey(0)
    kp, kn = jax.random.split(key)
    B, N, G = 2, 8, 16
    points = jax.random.uniform(kp, (B, N, 3), dtype=jnp.float32)    # in [0, 1)
    normals = jax.random.normal(kn, (B, N, 3), dtype=jnp.float32)
    normals = normals / jnp.linalg.norm(normals, axis=-1, keepdims=True)

    out = poisson_net_forward(points, normals, grid_size=G, sigma=1.5)
    out = jax.block_until_ready(out)
    assert out.shape == (B, G, G, G)
    assert bool(jnp.all(jnp.isfinite(out)))

    # Cross-check the Pallas hot path against a pure-JAX reference.
    field_V = point_rasterize(points, normals, (G, G, G))
    ref = jax.block_until_ready(_reference_div_smooth_sigmoid(field_V, 1.5))
    np.testing.assert_allclose(np.asarray(out), np.asarray(ref), rtol=1e-4, atol=1e-5)

    print("KERNEL_OK")
</pallas_src>

<mosaic_0001>
module attributes {stable_mosaic.version = 11 : i64} {
  func.func @kernel(%arg0: i32, %arg1: memref<1x1x16x256xf32, #tpu.memory_space<vmem>>, %arg2: memref<1x3x16x256xf32, #tpu.memory_space<vmem>>, %arg3: memref<16x16xf32, #tpu.memory_space<vmem>>, %arg4: memref<256x256xf32, #tpu.memory_space<vmem>>, %arg5: memref<1x16x256xf32, #tpu.memory_space<vmem>>) attributes {dimension_semantics = [#tpu.dimension_semantics<parallel>], iteration_bounds = array<i64: 2>, scalar_prefetch = 0 : i64, scratch_operands = 0 : i64, tpu.core_type = #tpu.core_type<tc>, window_params = [{transform_indices = @transform_0, window_bounds = array<i64: 1, 1, 16, 256>}, {transform_indices = @transform_1, window_bounds = array<i64: 1, 3, 16, 256>}, {pipeline_mode = #tpu.pipeline_mode<synchronous>, transform_indices = @transform_2, window_bounds = array<i64: 16, 16>}, {pipeline_mode = #tpu.pipeline_mode<synchronous>, transform_indices = @transform_3, window_bounds = array<i64: 256, 256>}, {transform_indices = @transform_4, window_bounds = array<i64: 1, 16, 256>}]} {
    %c0 = arith.constant 0 : index
    %c0_0 = arith.constant 0 : index
    %0 = vector.load %arg3[%c0, %c0_0] : memref<16x16xf32, #tpu.memory_space<vmem>>, vector<16x16xf32>
    %c0_1 = arith.constant 0 : index
    %c0_2 = arith.constant 0 : index
    %1 = vector.load %arg4[%c0_1, %c0_2] : memref<256x256xf32, #tpu.memory_space<vmem>>, vector<256x256xf32>
    %c0_3 = arith.constant 0 : index
    %c0_4 = arith.constant 0 : index
    %c0_5 = arith.constant 0 : index
    %c0_6 = arith.constant 0 : index
    %2 = vector.load %arg1[%c0_3, %c0_4, %c0_5, %c0_6] : memref<1x1x16x256xf32, #tpu.memory_space<vmem>>, vector<1x1x16x256xf32>
    %3 = vector.shape_cast %2 : vector<1x1x16x256xf32> to vector<16x256xf32>
    %c0_7 = arith.constant 0 : index
    %c1 = arith.constant 1 : index
    %c0_8 = arith.constant 0 : index
    %c0_9 = arith.constant 0 : index
    %4 = vector.load %arg2[%c0_7, %c1, %c0_8, %c0_9] : memref<1x3x16x256xf32, #tpu.memory_space<vmem>>, vector<1x1x16x256xf32>
    %5 = vector.shape_cast %4 : vector<1x1x16x256xf32> to vector<16x256xf32>
    %c0_10 = arith.constant 0 : index
    %c2 = arith.constant 2 : index
    %c0_11 = arith.constant 0 : index
    %c0_12 = arith.constant 0 : index
    %6 = vector.load %arg2[%c0_10, %c2, %c0_11, %c0_12] : memref<1x3x16x256xf32, #tpu.memory_space<vmem>>, vector<1x1x16x256xf32>
    %7 = vector.shape_cast %6 : vector<1x1x16x256xf32> to vector<16x256xf32>
    %8 = arith.subf %3, %5 : vector<16x256xf32>
    %c1_i32 = arith.constant 1 : i32
    %9 = tpu.dynamic_rotate %7 by %c1_i32 dim 0 : vector<16x256xf32>, i32 -> vector<16x256xf32>
    %10 = arith.subf %9, %7 : vector<16x256xf32>
    %11 = arith.addf %8, %10 : vector<16x256xf32>
    %cst = arith.constant dense<0.000000e+00> : vector<16x256xf32>
    %12 = tpu.matmul %0, %11, %cst {dimension_numbers = #tpu.dot_dimension_numbers<[1], [0], [0], [1], [0, 0, 1, 1], [], []>} : vector<16x16xf32>, vector<16x256xf32>, vector<16x256xf32> -> vector<16x256xf32>
    %cst_13 = arith.constant dense<0.000000e+00> : vector<16x256xf32>
    %13 = tpu.matmul %12, %1, %cst_13 {dimension_numbers = #tpu.dot_dimension_numbers<[1], [0], [0], [1], [0, 0, 1, 1], [], []>} : vector<16x256xf32>, vector<256x256xf32>, vector<16x256xf32> -> vector<16x256xf32>
    %14 = arith.negf %13 : vector<16x256xf32>
    %15 = math.exp %14 : vector<16x256xf32>
    %cst_14 = arith.constant 1.000000e+00 : f32
    %16 = vector.broadcast %cst_14 : f32 to vector<16x256xf32>
    %17 = arith.addf %16, %15 : vector<16x256xf32>
    %18 = arith.divf %16, %17 : vector<16x256xf32>
    %c0_15 = arith.constant 0 : index
    %c0_16 = arith.constant 0 : index
    %c0_17 = arith.constant 0 : index
    %19 = vector.load %arg5[%c0_15, %c0_16, %c0_17] : memref<1x16x256xf32, #tpu.memory_space<vmem>>, vector<1x16x256xf32>
    %20 = vector.shape_cast %19 : vector<1x16x256xf32> to vector<16x256xf32>
    %21 = vector.shape_cast %18 : vector<16x256xf32> to vector<1x16x256xf32>
    tpu.vector_store %arg5[%c0_15, %c0_16, %c0_17], %21 {strides = array<i32>} : memref<1x16x256xf32, #tpu.memory_space<vmem>>, vector<1x16x256xf32>,
    return
  }
  func.func @transform_0(%arg0: i32) -> (i32, i32, i32, i32) {
    %c1_i32 = arith.constant 1 : i32
    %0 = arith.muli %arg0, %c1_i32 : i32
    %c2_i32 = arith.constant 2 : i32
    %1 = arith.addi %0, %c2_i32 : i32
    %c1_i32_0 = arith.constant 1 : i32
    %2 = arith.subi %1, %c1_i32_0 : i32
    %c2_i32_1 = arith.constant 2 : i32
    %c0_i32 = arith.constant 0 : i32
    %3 = arith.cmpi eq, %c2_i32_1, %c0_i32 : i32
    %c1_i32_2 = arith.constant 1 : i32
    %4 = arith.select %3, %c1_i32_2, %c2_i32_1 : i32
    %5 = arith.remsi %2, %4 : i32
    %c0_i32_3 = arith.constant 0 : i32
    %6 = arith.cmpi ne, %5, %c0_i32_3 : i32
    %c0_i32_4 = arith.constant 0 : i32
    %7 = arith.cmpi slt, %5, %c0_i32_4 : i32
    %c0_i32_5 = arith.constant 0 : i32
    %8 = arith.cmpi slt, %4, %c0_i32_5 : i32
    %9 = arith.xori %7, %8 : i1
    %10 = arith.andi %9, %6 : i1
    %11 = arith.addi %5, %4 : i32
    %12 = arith.select %10, %11, %5 : i32
    %c0_i32_6 = arith.constant 0 : i32
    %c0_i32_7 = arith.constant 0 : i32
    %c0_i32_8 = arith.constant 0 : i32
    %c0_i32_9 = arith.constant 0 : i32
    return %12, %c0_i32_6, %c0_i32_7, %c0_i32_8 : i32, i32, i32, i32
  }
  func.func @transform_1(%arg0: i32) -> (i32, i32, i32, i32) {
    %c0_i32 = arith.constant 0 : i32
    %c0_i32_0 = arith.constant 0 : i32
    %c0_i32_1 = arith.constant 0 : i32
    %c0_i32_2 = arith.constant 0 : i32
    return %arg0, %c0_i32, %c0_i32_0, %c0_i32_1 : i32, i32, i32, i32
  }
  func.func @transform_2(%arg0: i32) -> (i32, i32) {
    %c0_i32 = arith.constant 0 : i32
    %c0_i32_0 = arith.constant 0 : i32
    %c0_i32_1 = arith.constant 0 : i32
    return %c0_i32, %c0_i32_0 : i32, i32
  }
  func.func @transform_3(%arg0: i32) -> (i32, i32) {
    %c0_i32 = arith.constant 0 : i32
    %c0_i32_0 = arith.constant 0 : i32
    %c0_i32_1 = arith.constant 0 : i32
    return %c0_i32, %c0_i32_0 : i32, i32
  }
  func.func @transform_4(%arg0: i32) -> (i32, i32, i32) {
    %c0_i32 = arith.constant 0 : i32
    %c0_i32_0 = arith.constant 0 : i32
    %c0_i32_1 = arith.constant 0 : i32
    return %arg0, %c0_i32, %c0_i32_0 : i32, i32, i32
  }
}

</mosaic_0001>

<bundles_post_ra>
// kernel: tpu_custom_call.1
= control target key start
LH: loop header
LB: loop body
LE: loop exit
PB: predicated region body
PF: predicated region fallthrough
CT: control target
= control target key end

     0   :  { %s1486_s0 = inlined_call_operand.hbm [shape: f32[2,3,16,256], index: 0, kind: input, shape index: {}]   ;;  %s1487_s1 = inlined_call_operand.hbm [shape: f32[2,3,16,256], index: 1, kind: input, shape index: {}]   ;;  %s1488_s2 = inlined_call_operand.hbm [shape: f32[16,16], index: 2, kind: input, shape index: {}]   ;;  %s1489_s3 = inlined_call_operand.hbm [shape: f32[256,256], index: 3, kind: input, shape index: {}]   ;;  %s1490_s4 = inlined_call_operand.hbm [shape: f32[2,16,256], index: 4, kind: output, shape index: {}]  }
   0x1   :  { %1499 = sst [smem:[#allocation20_spill]] %s1486_s0 }
   0x2   :  { %1500 = sst [smem:[#allocation21_spill]] %s1488_s2 }
   0x3   :  { %1501 = sst [smem:[#allocation22_spill]] %s1489_s3 }
   0x4   :  { %9 = vsyncpa [#allocation3], 0 }
   0x5   :  { %11 = vsyncpa [#allocation3 + $0x1], 0 }
   0x6   :  { %12 = vsyncpa [#allocation6], 0 }
   0x7   :  { %14 = vsyncpa [#allocation6 + $0x1], 0 }
   0x8   :  { %15 = vsyncpa [#allocation9], 0 }
   0x9   :  { %16 = vsyncpa [#allocation4], 0 }
   0xa   :  { %18 = vsyncpa [#allocation4 + $0x1], 0  ;;  %s1227_s15 = smov 0   ;;  %s1229_s16 = smov 0  }
   0xb   :  { %s1231_s17 = smov 0   ;;  %s1233_s18 = smov 0  }
   0xc   :  { %s1235_s19 = smov 0   ;;  %s1237_s20 = smov 0  }
   0xd   :  { %s1239_s21 = smov 0  }
   0xe LB: > { %1502 = sst [smem:[#allocation16_spill]] %s1176_s17  ;;  %s1263_s22 = sadd.s32 4294967295, %s1192_s21   ;;  %s1192_s21 = sphi %s1239_s21, %s1534_s21   ;;  %s1188_s20 = sphi %s1237_s20, %s1529_s20   ;;  %s1184_s19 = sphi %s1235_s19, %s1533_s19   ;;  %s1180_s18 = sphi %s1233_s18, %s1532_s18   ;;  %s1176_s17 = sphi %s1231_s17, %s1527_s17   ;;  %s1172_s16 = sphi %s1229_s16, %s1531_s16   ;;  %s1168_s15 = sphi %s1227_s15, %s1530_s15  }
   0xf   : > { %1503 = sst [smem:[#allocation17_spill]] %s1188_s20  ;;  %s804_s23 = sadd.s32 4294967294, %s1192_s21  }
  0x10   : > { %p1495_p0 = scmp.eq.s32.totalorder %s1263_s22, 0  ;;  %p96_p1 = scmp.ne.s32.totalorder %s1172_s16, %s1168_s15 }
  0x11   : > { %p168_p3 = scmp.eq.s32.totalorder %s804_s23, 1  ;;  %p811_p5 = scmp.ge.s32.totalorder %s1192_s21, 1 }
  0x12   : > { %p1272_p4 = por %p96_p1, %p1495_p0  ;;  %p175_p7 = scmp.lt.s32.totalorder %s1192_s21, 3 }
  0x13   : > { %p1277_p6 = por %p168_p3, %p96_p1  ;;  %s1506_s2 = sld [smem:[#allocation21_spill]] }
  0x14   : > { %p1285_p8 = pnand %p811_p5, %p175_p7  ;;  %s1194_s30 = smov [#allocation7]  }
  0x15   : > { %s188_s5 = sshll.u32 %s1194_s30, 4  ;;  %s1508_s3 = sld [smem:[#allocation22_spill]]  ;;  %s189_s5 = int_to_ptr.vmem [resolvable:$true] %s188_s5 }
  0x16   : > { %p866_p9 = pneg %p1285_p8  ;;  %s1195_s9 = smov 128  }
  0x17   : > { %s1196_s10 = smov 8   ;;  %s1197_s11 = smov [#allocation8]  }
  0x18   : > { %p867_p10 = pnand %p866_p9, %p1495_p0  ;;  %s202_s12 = sshll.u32 %s1197_s11, 4  ;;  %s203_s12 = int_to_ptr.vmem [resolvable:$true] %s202_s12 }
  0x19   : > { %s186_s28 = sshll.u32 %s1506_s2, 4  ;;  %s1491_s13 = smov 256   ;;  %s187_s28 = int_to_ptr.hbm [resolvable:$true] %s186_s28 }
  0x1a   : > { %869 = dma.hbm_to_vmem [thread:$0]  (!%p867_p10), %s187_s28, 256, %s189_s5, [#allocation6], %s1195_s9, %s1195_s9, %s1196_s10  }
  0x1b   : > { %s200_s8 = sshll.u32 %s1508_s3, 4  ;;  %s1493_s14 = smov 16   ;;  %s201_s8 = int_to_ptr.hbm [resolvable:$true] %s200_s8 }
  0x1c   : > { %872 = dma.hbm_to_vmem [thread:$0]  (!%p867_p10), %s201_s8, 8192, %s203_s12, [#allocation9], %s1491_s13, %s1491_s13, %s1493_s14  }
  0x1d   : > { %s1301_s23 = sadd.s32 1, %s1192_s21   ;;  %s57_s26 = sadd.s32 1, %s1188_s20 }
  0x1e   : > { %p29_p12 = scmp.lt.s32.totalorder %s1301_s23, 0  ;;  %s30_s27 = ssub.s32 0, %s1301_s23 }
  0x1f   : > { %s805_s28 = smin.u32 %s30_s27, %s1301_s23  ;;  %s41_s30 = sadd.s32 1, %s1301_s23 }
  0x20   : > { %s32_s5 = sand.u32 1, %s805_s28   ;;  %p42_p13 = scmp.lt.s32.totalorder %s41_s30, 0 }
  0x21   : > { %s33_s6 = ssub.s32 0, %s32_s5  ;;  %s43_s7 = ssub.s32 0, %s41_s30 }
  0x22   : > { %s1536_s6 = smov (!%p29_p12, %s33_s6), %s32_s5  ;;  %s808_s8 = smin.u32 %s43_s7, %s41_s30 }
  0x23   : > { %p64_p1 = scmp.ne.s32.totalorder %s1188_s20, %s1184_s19  ;;  %p807_p3 = scmp.lt.s32.totalorder %s1536_s6, 0 }
  0x24   : > { %s39_s9 = sadd.s32 2, %s1536_s6  ;;  %s45_s10 = sand.u32 1, %s808_s8  }
  0x25   : > { %p65_p5 = scmp.eq.s32.totalorder %s1192_s21, 0  ;;  %s1538_s9 = smov (!%p807_p3, %s39_s9), %s1536_s6 }
  0x26   : > { %s46_s11 = ssub.s32 0, %s45_s10  ;;  %p70_p9 = scmp.ne.s32.totalorder %s1184_s19, %s1180_s18 }
  0x27   : > { %p1313_p7 = por %p65_p5, %p64_p1  ;;  %s1540_s11 = smov (!%p42_p13, %s46_s11), %s45_s10 }
  0x28   : > { %p1496_p10 = scmp.lt.s32.totalorder %s1192_s21, 2  ;;  %p810_p12 = scmp.lt.s32.totalorder %s1540_s11, 0 }
  0x29   : > { %s52_s27 = sadd.s32 2, %s1540_s11  ;;  %p1323_p11 = por %p1495_p0, %p70_p9 }
  0x2a   : > { %s216_s5 = sand.u32 1, %s1188_s20   ;;  %s1542_s27 = smov (!%p810_p12, %s52_s27), %s1540_s11 }
  0x2b   : > { %s815_s6 = sshll.u32 %s216_s5, 5  ;;  %s54_s7 = ssub.s32 %s1538_s9, %s1542_s27 }
  0x2c   : > { %p55_p1 = scmp.eq.s32.totalorder %s54_s7, 0  ;;  %s848_s8 = smul.u32 96, %s1538_s9 }
  0x2d   : > { %s220_s30 = scalar_lea.vmem [#allocation2], %s815_s6  ;;  %p1332_p13 = pnand %p1496_p10, %p1313_p7 }
  0x2e   : > { %s241_s13 = sshll.u32 %s220_s30, 4  ;;  %s1513_s0 = sld [smem:[#allocation20_spill]]  ;;  %s242_s13 = int_to_ptr.vmem [resolvable:$true] %s241_s13 }
  0x2f   : > { %s1339_s10 = scalar_select %p55_p1, %s1188_s20, %s57_s26  }
  0x30   : > { %s217_s9 = scalar_lea.sflag [#allocation3], %s216_s5  ;;  %p1034_p7 = pneg %p1332_p13 }
  0x31   : > { %1512 = sst [smem:[#allocation18_spill]] %s1339_s10 }
  0x34   : > { %s238_s11 = scalar_lea.hbm %s1513_s0, %s848_s8  ;;  %s1037_s26 = scalar_lea.hbm %s1513_s0, 192 }
  0x35   : > { %s239_s27 = sshll.u32 %s238_s11, 4  ;;  %s240_s27 = int_to_ptr.hbm [resolvable:$true] %s239_s27 }
  0x36   : > { %s1030_s6 = sshra.s32 %s240_s27, 4  ;;  %s1031_s6 = int_to_ptr.hbm [resolvable:$true] %s1030_s6 }
  0x37   : > { %s1032_s12 = scalar_lea.hbm %s1031_s6, 32  ;;  %p1038_p1 = scmp.lt.s32.totalorder %s1031_s6, %s1513_s0 }
  0x38   : > { %p1033_p3 = scmp.ne.s32.totalorder %s1031_s6, %s1032_s12  ;;  %p1039_p0 = scmp.lt.s32.totalorder %s1037_s26, %s1032_s12 }
  0x3a   : > { %p1035_p9 = pnand %p1034_p7, %p1033_p3  ;;  %p1040_p10 = por %p1039_p0, %p1038_p1 }
  0x3c   : > { %p1036_p12 = pneg %p1035_p9 }
  0x3e   : > { %p1041_p2 = pnand %p1040_p10, %p1036_p12 }
  0x40   : > { %1044 = shalt.err (!%p1041_p2)
}
  0x41   : > { %s1514_s2 = smov 16   ;;  %s1515_s14 = smov 256  }
  0x42   : > { %876 = dma.hbm_to_vmem [thread:$0]  (!%p1332_p13), %s240_s27, 512, %s242_s13, %s217_s9, %s1515_s14, %s1515_s14, %s1514_s2  }
  0x43   : > { %s80_s3 = ssub.s32 %s1192_s21, %s1301_s23  ;;  %s83_s5 = sadd.s32 1, %s1176_s17 }
  0x44   : > { %p81_p0 = scmp.eq.s32.totalorder %s80_s3, 0  ;;  %p90_p2 = scmp.ne.s32.totalorder %s1176_s17, %s1172_s16 }
  0x45   : > { %s251_s8 = sand.u32 1, %s1192_s21   ;;  %p1517_p3 = scmp.eq.s32.totalorder %s1263_s22, 1 }
  0x46   : > { %s1364_s18 = scalar_select %p81_p0, %s1176_s17, %s83_s5  }
  0x47   : > { %p92_p10 = por %p90_p2, %p65_p5  ;;  %p1370_p7 = por %p1517_p3, %p90_p2 }
  0x48   : > { %1516 = sst [smem:[#allocation19_spill]] %s1364_s18  ;;  %s253_s11 = sand.u32 1, %s1176_s17  }
  0x49   : > { %s849_s6 = smul.u32 96, %s253_s11  ;;  %p1519_p9 = scmp.lt.s32.totalorder %s1192_s21, 2 }
  0x4a   : > { %s850_s13 = smul.u32 96, %s1192_s21  ;;  %s252_s5 = scalar_lea.sflag [#allocation6], %s251_s8 }
  0x4b   : > { %p1377_p12 = pnand %p1519_p9, %p92_p10  ;;  %s255_s30 = scalar_lea.vmem [#allocation5], %s849_s6 }
  0x4c   : > { %s260_s7 = scalar_lea.hbm %s1487_s1, %s850_s13  ;;  %s263_s26 = sshll.u32 %s255_s30, 4  ;;  %s264_s26 = int_to_ptr.vmem [resolvable:$true] %s263_s26 }
  0x4d   : > { %s261_s3 = sshll.u32 %s260_s7, 4  ;;  %p1064_p13 = pneg %p1377_p12  ;;  %s262_s3 = int_to_ptr.hbm [resolvable:$true] %s261_s3 }
  0x4e   : > { %s1060_s0 = sshra.s32 %s262_s3, 4  ;;  %s1067_s17 = scalar_lea.hbm %s1487_s1, 192  ;;  %s1061_s0 = int_to_ptr.hbm [resolvable:$true] %s1060_s0 }
  0x4f   : > { %s1062_s11 = scalar_lea.hbm %s1061_s0, 96  ;;  %p1068_p2 = scmp.lt.s32.totalorder %s1061_s0, %s1487_s1 }
  0x50   : > { %p1063_p5 = scmp.ne.s32.totalorder %s1061_s0, %s1062_s11  ;;  %p1069_p10 = scmp.lt.s32.totalorder %s1067_s17, %s1062_s11 }
  0x52   : > { %p1065_p1 = pnand %p1064_p13, %p1063_p5  ;;  %p1070_p3 = por %p1069_p10, %p1068_p2 }
  0x54   : > { %p1066_p0 = pneg %p1065_p1 }
  0x56   : > { %p1071_p9 = pnand %p1070_p3, %p1066_p0 }
  0x58   : > { %1074 = shalt.err (!%p1071_p9)
}
  0x59   : > { %879 = dma.hbm_to_vmem [thread:$0]  (!%p1377_p12), %s262_s3, 1536, %s264_s26, %s252_s5, %s1515_s14, %s1515_s14, %s1514_s2  }
  0x5a   : > { %275 = sbr.rel (%p1285_p8) target bundleno = 421 (0x1a5), region = 36  ;;  %s277_s20 = sand.u32 (!%p1285_p8), 1, %s1184_s19  }
  0x5b   : > { %s822_s8 = sshll.u32 (!%p1285_p8), %s277_s20, 5  ;;  %s278_s18 = scalar_lea.sflag (!%p1285_p8), [#allocation3], %s277_s20 }
  0x5c   : > { %s1401_s6 = scalar_lea.vmem (!%p1285_p8), [#allocation2], %s822_s8 }
  0x5f   : > { %1147 = dma.done.wait (%p1323_p11), %s278_s18, 512  }
  0x60   : > { %1149 = vsyncadd (%p1323_p11), %s278_s18, 4294966784  ;;  %s287_s0 = sand.u32 1, %s1263_s22   ;;  %s1409_s17 = sand.u32 1, %s1172_s16  }
  0x61   : > { %s851_s29 = smul.u32 96, %s1409_s17  ;;  %s288_s2 = scalar_lea.sflag [#allocation6], %s287_s0 }
  0x63   : > { %s291_s14 = scalar_lea.vmem [#allocation5], %s851_s29 }
  0x64   : > { %1151 = dma.done.wait (%p1272_p4), %s288_s2, 1536  }
  0x65   : > { %1153 = vsyncadd (%p1272_p4), %s288_s2, 4294965760  ;;  %p1521_p8 = scmp.eq.s32.totalorder %s1263_s22, 0 }
  0x67   : > { %1155 = dma.done.wait (%p1521_p8), [#allocation6], 256   ;;  %p1522_p11 = pmov %p1521_p8 }
  0x68   : > { %p1523_p12 = pmov %p1521_p8 }
  0x69   : > { %1157 = vsyncadd (%p1522_p11), [#allocation6], 4294967040 }
  0x6a   : > { %1159 = dma.done.wait (%p1523_p12), [#allocation9], 8192   ;;  %p1524_p5 = pmov %p1521_p8 }
  0x6b   : > { %v433_v0 = vlaneseq  ;;  %v413_v2 = vld [vmem:[%s1401_s6 + $0x10] sm:$0xff]  ;;  %v830_v4 = vld [vmem:[%s291_s14 + $0x40] sm:$0xff]  ;;  %v414_v7 = vld [vmem:[%s1401_s6 + $0x18] sm:$0xff]  ;;  %vm448_vm1 = vcmask 130048   ;;  %s825_s24 = sshll.u32 %s1409_s17, 5  ;;  %s847_s12 = sshll.u32 %s1263_s22, 5 }
  0x6c   : > { %1161 = vsyncadd (%p1524_p5), [#allocation9], 4294959104  ;;  %v828_v3 = vld [vmem:[%s291_s14 + $0x30] sm:$0xff]  ;;  %v429_v6 = vrot.slane %v830_v4, 7  ;;  %v829_v8 = vld [vmem:[%s291_s14 + $0x38] sm:$0xff]  ;;  %s1437_s28 = scalar_lea.vmem [#allocation10], %s825_s24  ;;  %s685_s30 = scalar_lea.hbm %s1490_s4, %s847_s12 }
  0x6d   : > { %v434_v1 = vshrl.u32 %v433_v0, 7  ;;  %v832_v5 = vld [vmem:[%s291_s14 + $0x50] sm:$0xff]  ;;  %v831_v10 = vld [vmem:[%s291_s14 + $0x48] sm:$0xff]  ;;  %v833_v11 = vld [vmem:[%s291_s14 + $0x58] sm:$0xff]  ;;  %v427_v13 = vsub.f32 %v413_v2, %v828_v3  ;;  %v428_v14 = vsub.f32 %v414_v7, %v829_v8  ;;  %s686_s22 = sshll.u32 %s1437_s28, 4  ;;  %s688_s26 = sshll.u32 %s685_s30, 4  ;;  %s687_s22 = int_to_ptr.vmem [resolvable:$true] %s686_s22  ;;  %s689_s26 = int_to_ptr.hbm [resolvable:$true] %s688_s26 }
  0x6e   : > { %v431_v9 = vrot.slane %v832_v5, 7  ;;  %v411_v12 = vld [vmem:[%s1401_s6] sm:$0xff]  ;;  %v430_v15 = vrot.slane %v831_v10, 7  ;;  %v432_v16 = vrot.slane %v833_v11, 7  ;;  %v412_v18 = vld [vmem:[%s1401_s6 + $0x8] sm:$0xff]  ;;  %v375_v32 = vld [vmem:[#allocation8 + $0xe0] sm:$0xff] }
  0x6f   : > { %vm435_vm0 = vcmp.lt.s32.totalorder %v434_v1, 1  ;;  %v826_v17 = vld [vmem:[%s291_s14 + $0x20] sm:$0xff]  ;;  %v827_v19 = vld [vmem:[%s291_s14 + $0x28] sm:$0xff]  ;;  %v407_v33 = vld [vmem:[#allocation8 + $0x1e0] sm:$0xff]  ;;  %s674_s3 = scalar_lea.sflag [#allocation4], %s1409_s17  ;;  %s1104_s5 = sshra.s32 %s689_s26, 4  ;;  %s1105_s5 = int_to_ptr.hbm [resolvable:$true] %s1104_s5 }
  0x70   : > { %v436_v20 = vsel %vm435_vm0, %v429_v6, %v431_v9  ;;  %v425_v21 = vsub.f32 %v411_v12, %v826_v17  ;;  %v438_v22 = vsel %vm435_vm0, %v431_v9, %v429_v6  ;;  %v426_v23 = vsub.f32 %v412_v18, %v827_v19  ;;  %v377_v24 = vld [vmem:[#allocation8 + $0xf0] sm:$0xff]  ;;  %v371_v40 = vld [vmem:[#allocation8 + $0xc0] sm:$0xff]  ;;  %v378_v42 = vld [vmem:[#allocation8 + $0xf8] sm:$0xff]  ;;  %s1106_s11 = scalar_lea.hbm %s1105_s5, 32  ;;  %s1110_s20 = scalar_lea.hbm %s1490_s4, 64 }
  0x71   : > { %v442_v25 = vsub.f32 %v436_v20, %v832_v5  ;;  %v437_v26 = vsel %vm435_vm0, %v430_v15, %v432_v16  ;;  %v440_v27 = vsub.f32 %v438_v22, %v830_v4  ;;  %v439_v28 = vsel %vm435_vm0, %v432_v16, %v430_v15  ;;  %501 = vmatpush.msra.mxu2 %v377_v24  ;;  %v409_v29 = vld [vmem:[#allocation8 + $0x1f0] sm:$0xff]  ;;  %v410_v43 = vld [vmem:[#allocation8 + $0x1f8] sm:$0xff]  ;;  %v403_v44 = vld [vmem:[#allocation8 + $0x1c0] sm:$0xff]  ;;  %p1107_p4 = scmp.ne.s32.totalorder %s1105_s5, %s1106_s11  ;;  %p1111_p0 = scmp.lt.s32.totalorder %s1105_s5, %s1490_s4 }
  0x72   : > { %v443_v30 = vsub.f32 %v437_v26, %v833_v11  ;;  %v441_v31 = vsub.f32 %v439_v28, %v831_v10  ;;  %524 = vmatpush.msra.mxu3 %v409_v29  ;;  %v373_v36 = vld [vmem:[#allocation8 + $0xd0] sm:$0xff]  ;;  %v376_v45 = vld [vmem:[#allocation8 + $0xe8] sm:$0xff]  ;;  %v374_v49 = vld [vmem:[#allocation8 + $0xd8] sm:$0xff]  ;;  %p1112_p2 = scmp.lt.s32.totalorder %s1110_s20, %s1106_s11 }
  0x73   : > { %v446_v34 = vadd.f32 %v442_v25, %v427_v13  ;;  %v444_v35 = vadd.f32 %v440_v27, %v425_v21  ;;  %502 = vmatpush.msra.mxu2 %v375_v32  ;;  %v405_v37 = vld [vmem:[#allocation8 + $0x1d0] sm:$0xff]  ;;  %v408_v47 = vld [vmem:[#allocation8 + $0x1e8] sm:$0xff]  ;;  %v367_v50 = vld [vmem:[#allocation8 + $0xa0] sm:$0xff]  ;;  %p1108_p13 = pnand %p1107_p4, %p1370_p7 }
  0x74   : > { %v447_v38 = vadd.f32 %v443_v30, %v428_v14  ;;  %v445_v39 = vadd.f32 %v441_v31, %v426_v23  ;;  %525 = vmatpush.msra.mxu3 %v407_v33  ;;  %v345_v41 = vld [vmem:[#allocation7] sm:$0xff]  ;;  %v406_v51 = vld [vmem:[#allocation8 + $0x1d8] sm:$0xff]  ;;  %v399_v52 = vld [vmem:[#allocation8 + $0x1a0] sm:$0xff]  ;;  %p1113_p10 = por %p1112_p2, %p1111_p0 }
  0x75   : > { %469 = vmatpush.msra.mxu0 %v446_v34  ;;  %503 = vmatpush.msra.mxu2 %v373_v36  ;;  %v369_v46 = vld [vmem:[#allocation8 + $0xb0] sm:$0xff]  ;;  %v372_v53 = vld [vmem:[#allocation8 + $0xc8] sm:$0xff]  ;;  %v346_v55 = vld [vmem:[#allocation7 + $0x8] sm:$0xff]  ;;  %p1109_p1 = pneg %p1108_p13 }
  0x76   : > { %492 = vmatpush.msra.mxu1 %v447_v38  ;;  %526 = vmatpush.msra.mxu3 %v405_v37  ;;  %v401_v48 = vld [vmem:[#allocation8 + $0x1b0] sm:$0xff]  ;;  %v404_v56 = vld [vmem:[#allocation8 + $0x1c8] sm:$0xff]  ;;  %v370_v57 = vld [vmem:[#allocation8 + $0xb8] sm:$0xff] }
  0x77   : > { %470 = vmatpush.msra.mxu0 %v444_v35  ;;  %504 = vmatpush.msra.mxu2 %v371_v40  ;;  %v365_v54 = vld [vmem:[#allocation8 + $0x90] sm:$0xff]  ;;  %v402_v58 = vld [vmem:[#allocation8 + $0x1b8] sm:$0xff]  ;;  %v368_v60 = vld [vmem:[#allocation8 + $0xa8] sm:$0xff]  ;;  %p1114_p3 = pnand %p1113_p10, %p1109_p1 }
  0x78   : > { %493 = vmatpush.msra.mxu1 %v445_v39  ;;  %834 = vmatmul.msk.f32.vlgmr.msra.gmra.mxu0 %vm448_vm1, %v345_v41  ;;  %v397_v59 = vld [vmem:[#allocation8 + $0x190] sm:$0xff]  ;;  %v363_v61 = vld [vmem:[#allocation8 + $0x80] sm:$0xff]  ;;  %v400_v62 = vld [vmem:[#allocation8 + $0x1a8] sm:$0xff] }
  0x79   : > { %836 = vmatmul.msk.f32.vlgmr.msra.gmra.mxu1 %vm448_vm1, %v345_v41  ;;  %547 = vmatpush.msrb.mxu0 %v378_v42  ;;  %v395_v63 = vld [vmem:[#allocation8 + $0x180] sm:$0xff]  ;;  %v366_v0 = vld [vmem:[#allocation8 + $0x98] sm:$0xff]  ;;  %v361_v1 = vld [vmem:[#allocation8 + $0x70] sm:$0xff] }
  0x7a   : > { %570 = vmatpush.msrb.mxu1 %v410_v43  ;;  %527 = vmatpush.msra.mxu3 %v403_v44  ;;  %v398_v2 = vld [vmem:[#allocation8 + $0x198] sm:$0xff]  ;;  %v393_v3 = vld [vmem:[#allocation8 + $0x170] sm:$0xff]  ;;  %v364_v4 = vld [vmem:[#allocation8 + $0x88] sm:$0xff] }
  0x7b   : > { %548 = vmatpush.msrb.mxu0 %v376_v45  ;;  %505 = vmatpush.msra.mxu2 %v369_v46  ;;  %v359_v5 = vld [vmem:[#allocation8 + $0x60] sm:$0xff]  ;;  %v396_v6 = vld [vmem:[#allocation8 + $0x188] sm:$0xff]  ;;  %v362_v8 = vld [vmem:[#allocation8 + $0x78] sm:$0xff] }
  0x7c   : > { %571 = vmatpush.msrb.mxu1 %v408_v47  ;;  %528 = vmatpush.msra.mxu3 %v401_v48  ;;  %v391_v7 = vld [vmem:[#allocation8 + $0x160] sm:$0xff]  ;;  %v357_v9 = vld [vmem:[#allocation8 + $0x50] sm:$0xff]  ;;  %v394_v10 = vld [vmem:[#allocation8 + $0x178] sm:$0xff] }
  0x7d   : > { %549 = vmatpush.msrb.mxu0 %v374_v49  ;;  %506 = vmatpush.msra.mxu2 %v367_v50  ;;  %v389_v11 = vld [vmem:[#allocation8 + $0x150] sm:$0xff]  ;;  %v360_v12 = vld [vmem:[#allocation8 + $0x68] sm:$0xff]  ;;  %v355_v13 = vld [vmem:[#allocation8 + $0x40] sm:$0xff] }
  0x7e   : > { %572 = vmatpush.msrb.mxu1 %v406_v51  ;;  %529 = vmatpush.msra.mxu3 %v399_v52  ;;  %v392_v14 = vld [vmem:[#allocation8 + $0x168] sm:$0xff]  ;;  %v387_v15 = vld [vmem:[#allocation8 + $0x140] sm:$0xff]  ;;  %v358_v16 = vld [vmem:[#allocation8 + $0x58] sm:$0xff] }
  0x7f   : > { %550 = vmatpush.msrb.mxu0 %v372_v53  ;;  %507 = vmatpush.msra.mxu2 %v365_v54  ;;  %v353_v17 = vld [vmem:[#allocation8 + $0x30] sm:$0xff]  ;;  %v390_v18 = vld [vmem:[#allocation8 + $0x158] sm:$0xff]  ;;  %v356_v20 = vld [vmem:[#allocation8 + $0x48] sm:$0xff] }
  0x80   : > { %835 = vmatmul.msk.f32.gmra.mxu0 %vm448_vm1, %v346_v55  ;;  %573 = vmatpush.msrb.mxu1 %v404_v56  ;;  %v385_v19 = vld [vmem:[#allocation8 + $0x130] sm:$0xff]  ;;  %v351_v21 = vld [vmem:[#allocation8 + $0x20] sm:$0xff]  ;;  %v388_v22 = vld [vmem:[#allocation8 + $0x148] sm:$0xff] }
  0x81   : > { %837 = vmatmul.msk.f32.gmra.mxu1 %vm448_vm1, %v346_v55  ;;  %551 = vmatpush.msrb.mxu0 %v370_v57  ;;  %v383_v23 = vld [vmem:[#allocation8 + $0x120] sm:$0xff]  ;;  %v354_v24 = vld [vmem:[#allocation8 + $0x38] sm:$0xff]  ;;  %v349_v25 = vld [vmem:[#allocation8 + $0x10] sm:$0xff] }
  0x82   : > { %574 = vmatpush.msrb.mxu1 %v402_v58  ;;  %530 = vmatpush.msra.mxu3 %v397_v59  ;;  %v386_v26 = vld [vmem:[#allocation8 + $0x138] sm:$0xff]  ;;  %v381_v27 = vld [vmem:[#allocation8 + $0x110] sm:$0xff]  ;;  %v352_v28 = vld [vmem:[#allocation8 + $0x28] sm:$0xff] }
  0x83   : > { %552 = vmatpush.msrb.mxu0 %v368_v60  ;;  %508 = vmatpush.msra.mxu2 %v363_v61  ;;  %v384_v29 = vld [vmem:[#allocation8 + $0x128] sm:$0xff]  ;;  %v350_v30 = vld [vmem:[#allocation8 + $0x18] sm:$0xff]  ;;  %v347_v32 = vld [vmem:[#allocation8] sm:$0xff] }
  0x84   : > { %575 = vmatpush.msrb.mxu1 %v400_v62  ;;  %531 = vmatpush.msra.mxu3 %v395_v63  ;;  %v382_v31 = vld [vmem:[#allocation8 + $0x118] sm:$0xff]  ;;  %v379_v33 = vld [vmem:[#allocation8 + $0x100] sm:$0xff]  ;;  %v348_v34 = vld [vmem:[#allocation8 + $0x8] sm:$0xff] }
  0x85   : > { %553 = vmatpush.msrb.mxu0 %v366_v0  ;;  %509 = vmatpush.msra.mxu2 %v361_v1  ;;  %v380_v35 = vld [vmem:[#allocation8 + $0x108] sm:$0xff] }
  0x86   : > { %576 = vmatpush.msrb.mxu1 %v398_v2  ;;  %532 = vmatpush.msra.mxu3 %v393_v3 }
  0x87   : > { %554 = vmatpush.msrb.mxu0 %v364_v4  ;;  %510 = vmatpush.msra.mxu2 %v359_v5 }
  0x88   : > { %577 = vmatpush.msrb.mxu1 %v396_v6  ;;  %533 = vmatpush.msra.mxu3 %v391_v7 }
  0x89   : > { %555 = vmatpush.msrb.mxu0 %v362_v8  ;;  %511 = vmatpush.msra.mxu2 %v357_v9 }
  0x8a   : > { %578 = vmatpush.msrb.mxu1 %v394_v10  ;;  %534 = vmatpush.msra.mxu3 %v389_v11 }
  0x8b   : > { %556 = vmatpush.msrb.mxu0 %v360_v12  ;;  %512 = vmatpush.msra.mxu2 %v355_v13 }
  0x8c   : > { %579 = vmatpush.msrb.mxu1 %v392_v14  ;;  %535 = vmatpush.msra.mxu3 %v387_v15 }
  0x8d   : > { %557 = vmatpush.msrb.mxu0 %v358_v16  ;;  %513 = vmatpush.msra.mxu2 %v353_v17 }
  0x8e   : > { %580 = vmatpush.msrb.mxu1 %v390_v18  ;;  %536 = vmatpush.msra.mxu3 %v385_v19 }
  0x8f   : > { %558 = vmatpush.msrb.mxu0 %v356_v20  ;;  %514 = vmatpush.msra.mxu2 %v351_v21 }
  0x90   : > { %581 = vmatpush.msrb.mxu1 %v388_v22  ;;  %537 = vmatpush.msra.mxu3 %v383_v23 }
  0x91   : > { %559 = vmatpush.msrb.mxu0 %v354_v24  ;;  %515 = vmatpush.msra.mxu2 %v349_v25 }
  0x92   : > { %582 = vmatpush.msrb.mxu1 %v386_v26  ;;  %538 = vmatpush.msra.mxu3 %v381_v27 }
  0x93   : > { %560 = vmatpush.msrb.mxu0 %v352_v28  ;;  %516 = vmatpush.msra.mxu2 %v347_v32 }
  0x94   : > { %583 = vmatpush.msrb.mxu1 %v384_v29  ;;  %539 = vmatpush.msra.mxu3 %v379_v33 }
  0x95   : > { %561 = vmatpush.msrb.mxu0 %v350_v30 }
  0x96   : > { %584 = vmatpush.msrb.mxu1 %v382_v31 }
  0x97   : > { %562 = vmatpush.msrb.mxu0 %v348_v34 }
  0x98   : > { %585 = vmatpush.msrb.mxu1 %v380_v35 }
  0xf5   : > { %v472_v36 = vpop.f32.mrf.mxu0 }
  0xf6   : > { %v495_v37 = vpop.f32.mrf.mxu1  ;;  %517 = vmatmul.f32.vlgmr.msra.gmra.mxu2 %v472_v36  ;;  %563 = vmatmul.f32.vlgmr.msrb.gmra.mxu0 %v472_v36 }
  0xf7   : > { %540 = vmatmul.f32.vlgmr.msra.gmra.mxu3 %v495_v37  ;;  %586 = vmatmul.f32.vlgmr.msrb.gmra.mxu1 %v495_v37 }
  0xfd   : > { %v475_v38 = vpop.f32.mrf.mxu0 }
  0xfe   : > { %v498_v39 = vpop.f32.mrf.mxu1  ;;  %520 = vmatmul.f32.gmra.mxu2 %v475_v38  ;;  %566 = vmatmul.f32.gmra.mxu0 %v475_v38 }
  0xff   : > { %543 = vmatmul.f32.gmra.mxu3 %v498_v39  ;;  %589 = vmatmul.f32.gmra.mxu1 %v498_v39 }
 0x173   : > { %v564_v40 = vpop.f32.mrf.mxu0 }
 0x174   : > { %v587_v41 = vpop.f32.mrf.mxu1 }
 0x175   : > { %v588_v42 = vadd.f32 %v587_v41, %v564_v40 }
 0x177   : > { %v839_v43 = vmul.f32 -1.442695, %v588_v42 }
 0x179   : > { %954 = vpow2.f32 %v839_v43  ;;  %v518_v44 = vpop.f32.mrf.mxu2 }
 0x17a   : > { %v541_v45 = vpop.f32.mrf.mxu3 }
 0x17b   : > { %v542_v46 = vadd.f32 %v541_v45, %v518_v44  ;;  %v567_v47 = vpop.f32.mrf.mxu0 }
 0x17c   : > { %v590_v48 = vpop.f32.mrf.mxu1 }
 0x17d   : > { %v838_v49 = vmul.f32 -1.442695, %v542_v46  ;;  %v591_v50 = vadd.f32 %v590_v48, %v567_v47 }
 0x17f   : > { %v955_v51 = vpop.eup %954  ;;  %956 = vpow2.f32 %v838_v49  ;;  %v841_v52 = vmul.f32 -1.442695, %v591_v50 }
 0x180   : > { %v606_v53 = vadd.f32 1.0, %v955_v51 }
 0x181   : > { %958 = vpow2.f32 %v841_v52  ;;  %v521_v54 = vpop.f32.mrf.mxu2 }
 0x182   : > { %960 = vrcp.f32 %v606_v53  ;;  %v544_v55 = vpop.f32.mrf.mxu3  ;;  %v635_v1 = vand.u32 2147483648, %v606_v53  ;;  %v633_v4 = vand.u32 2147483647, %v606_v53  ;;  %vm629_vm3 = vweird.f32 %v606_v53 }
 0x183   : > { %v545_v56 = vadd.f32 %v544_v55, %v521_v54 }
 0x184   : > { %v636_v9 = vor.u32 1.1754944e-38, %v635_v1  ;;  %vm634_vm5 = vcmp.eq.f32.partialorder %v633_v4, 8.507059e+37 }
 0x185   : > { %v957_v57 = vpop.eup %956  ;;  %v840_v58 = vmul.f32 -1.442695, %v545_v56 }
 0x186   : > { %v605_v59 = vadd.f32 1.0, %v957_v57 }
 0x187   : > { %v959_v60 = vpop.eup %958  ;;  %962 = vpow2.f32 %v840_v58 }
 0x188   : > { %v961_v61 = vpop.eup %960  ;;  %964 = vrcp.f32 %v605_v59  ;;  %v608_v63 = vadd.f32 1.0, %v959_v60  ;;  %v620_v14 = vand.u32 2147483648, %v605_v59  ;;  %v618_v17 = vand.u32 2147483647, %v605_v59 }
 0x189   : > { %v625_v62 = vmul.f32 %v961_v61, %v606_v53  ;;  %vm630_vm2 = vweird.f32 %v961_v61  ;;  %vm614_vm7 = vweird.f32 %v605_v59 }
 0x18a   : > { %966 = vrcp.f32 %v608_v63  ;;  %vm631_vm4 = vmor %vm629_vm3, %vm630_vm2  ;;  %v665_v20 = vand.u32 2147483648, %v608_v63  ;;  %v621_v22 = vor.u32 1.1754944e-38, %v620_v14  ;;  %v663_v24 = vand.u32 2147483647, %v608_v63 }
 0x18b   : > { %v626_v0 = vsub.f32 1.0, %v625_v62  ;;  %vm619_vm10 = vcmp.eq.f32.partialorder %v618_v17, 8.507059e+37  ;;  %vm659_vm11 = vweird.f32 %v608_v63 }
 0x18c   : > { %v666_v29 = vor.u32 1.1754944e-38, %v665_v20  ;;  %vm664_vm13 = vcmp.eq.f32.partialorder %v663_v24, 8.507059e+37 }
 0x18d   : > { %v963_v2 = vpop.eup %962  ;;  %v627_v3 = vmul.f32 %v961_v61, %v626_v0 }
 0x18e   : > { %v965_v5 = vpop.eup %964  ;;  %v607_v6 = vadd.f32 1.0, %v963_v2 }
 0x18f   : > { %v628_v7 = vadd.f32 %v961_v61, %v627_v3  ;;  %v610_v8 = vmul.f32 %v965_v5, %v605_v59  ;;  %vm615_vm6 = vweird.f32 %v965_v5 }
 0x190   : > { %968 = vrcp.f32 %v607_v6  ;;  %v967_v10 = vpop.eup %966  ;;  %vm616_vm8 = vmor %vm614_vm7, %vm615_vm6  ;;  %v650_v32 = vand.u32 2147483648, %v607_v6  ;;  %v648_v35 = vand.u32 2147483647, %v607_v6  ;;  %vm644_vm15 = vweird.f32 %v607_v6 }
 0x191   : > { %v632_v11 = vsel %vm631_vm4, %v961_v61, %v628_v7  ;;  %v611_v12 = vsub.f32 1.0, %v610_v8  ;;  %v655_v15 = vmul.f32 %v967_v10, %v608_v63  ;;  %vm660_vm9 = vweird.f32 %v967_v10 }
 0x192   : > { %v637_v13 = vsel %vm634_vm5, %v636_v9, %v632_v11  ;;  %vm661_vm12 = vmor %vm659_vm11, %vm660_vm9  ;;  %v651_v37 = vor.u32 1.1754944e-38, %v650_v32  ;;  %vm649_vm1 = vcmp.eq.f32.partialorder %v648_v35, 8.507059e+37 }
 0x193   : > { %670 = vst [vmem:[%s1437_s28 + $0x8] sm:$0xff] %v637_v13  ;;  %v612_v16 = vmul.f32 %v965_v5, %v611_v12  ;;  %v656_v18 = vsub.f32 1.0, %v655_v15 }
 0x195   : > { %v613_v19 = vadd.f32 %v965_v5, %v612_v16  ;;  %v657_v23 = vmul.f32 %v967_v10, %v656_v18 }
 0x196   : > { %v969_v21 = vpop.eup %968 }
 0x197   : > { %v617_v25 = vsel %vm616_vm8, %v965_v5, %v613_v19  ;;  %v640_v26 = vmul.f32 %v969_v21, %v607_v6  ;;  %v658_v28 = vadd.f32 %v967_v10, %v657_v23  ;;  %vm645_vm14 = vweird.f32 %v969_v21 }
 0x198   : > { %v622_v27 = vsel %vm619_vm10, %v621_v22, %v617_v25  ;;  %vm646_vm0 = vmor %vm644_vm15, %vm645_vm14 }
 0x199   : > { %669 = vst [vmem:[%s1437_s28] sm:$0xff] %v622_v27  ;;  %v641_v30 = vsub.f32 1.0, %v640_v26  ;;  %v662_v31 = vsel %vm661_vm12, %v967_v10, %v658_v28 }
 0x19a   : > { %v667_v33 = vsel %vm664_vm13, %v666_v29, %v662_v31 }
 0x19b   : > { %v642_v34 = vmul.f32 %v969_v21, %v641_v30  ;;  %672 = vst [vmem:[%s1437_s28 + $0x18] sm:$0xff] %v667_v33 }
 0x19d   : > { %v643_v36 = vadd.f32 %v969_v21, %v642_v34 }
 0x19f   : > { %v647_v38 = vsel %vm646_vm0, %v969_v21, %v643_v36 }
 0x1a0   : > { %v652_v39 = vsel %vm649_vm1, %v651_v37, %v647_v38 }
 0x1a1   : > { %671 = vst [vmem:[%s1437_s28 + $0x10] sm:$0xff] %v652_v39 }
 0x1a2   : > { %1117 = shalt.err (!%p1114_p3)
}
 0x1a3   : > { %s1200_s6 = smov 256   ;;  %s1201_s0 = smov 16  }
 0x1a4   : > { %864 = dma.vmem_to_hbm [thread:$0]  (%p1370_p7), %s687_s22, 512, %s689_s26, %s674_s3, %s1200_s6, %s1200_s6, %s1201_s0  }
 0x1a5 PF: > { %s703_s17 = sand.u32 1, %s1168_s15   ;;  %p1525_p9 = scmp.ge.s32.totalorder %s1192_s21, 2 }
 0x1a6   : > { %s704_s29 = scalar_lea.sflag [#allocation4], %s703_s17 }
 0x1a7   : > { %p881_p8 = pnand %p1525_p9, %p1277_p6 }
 0x1a9   : > { %p882_p11 = pneg %p881_p8 }
 0x1ab   : > { %1163 = dma.done.wait (%p882_p11), %s704_s29, 512  }
 0x1ac   : > { %1165 = vsyncadd (%p882_p11), %s704_s29, 4294966784  ;;  %s1526_s2 = sld [smem:[#allocation16_spill]]  ;;  %p21_p7 = scmp.ge.s32.totalorder %s1301_s23, 4  }
 0x1ad   : > { %s1527_s17 = sld [smem:[#allocation19_spill]]  ;;  %s1530_s15 = smov %s1172_s16 }
 0x1ae   : > { %s1528_s14 = sld [smem:[#allocation17_spill]]  ;;  %s1532_s18 = smov %s1184_s19 }
 0x1af   : > { %s1529_s20 = sld [smem:[#allocation18_spill]]  ;;  %s1534_s21 = smov %s1301_s23 }
 0x1b0   :  { %23 = sbr.rel (!%p21_p7) target bundleno = 14 (0xe), region = 104 }
 0x1b2   : > { %s1531_s16 = smov %s1526_s2 }
 0x1b4   : > { %s1533_s19 = smov %s1528_s14 }
 0x1b5   :  { %710 = vsyncpa [#allocation3], 1 }
 0x1b6   :  { %712 = vsyncpa [#allocation3 + $0x1], 1 }
 0x1b7   :  { %713 = vsyncpa [#allocation6], 1 }
 0x1b8   :  { %715 = vsyncpa [#allocation6 + $0x1], 1 }
 0x1b9   :  { %716 = vsyncpa [#allocation9], 1 }
 0x1ba   :  { %717 = vsyncpa [#allocation4], 1 }
 0x1bb   :  { %719 = vsyncpa [#allocation4 + $0x1], 1 }

</bundles_post_ra>
